<compile_context>
chip_gen: v7x
topology: tpu7x:2x2x1
jax: 0.10.0
libtpu: 0.0.40
codegen_flags: <defaults>
</compile_context>

<pallas_src>
import math

import jax
import jax.numpy as jnp
from jax.experimental import pallas as pl
from jax.experimental.pallas import tpu as pltpu


def _kv_attention_kernel(enc_ref,            # [Bb, T, E]
                         dec_ref,            # [Bb, D]
                         lens_ref,           # [Bb, 1] int32
                         wk_ref, bk_ref,     # [A, E], [1, A]   (Wk native layout)
                         wqT_ref, bq_ref,    # [D, A], [1, A]   (Wq pre-transposed)
                         wvT_ref, bv_ref,    # [E, O], [1, O]   (Wv pre-transposed)
                         out_ref,            # [Bb, O]
                         attw_ref):          # [Bb, T]  (lane-dense slab)
    Bb, T, E = enc_ref.shape
    A = wk_ref.shape[0]
    inv_scaling = 1.0 / math.sqrt(float(A))

    enc = enc_ref[...]                                   # [Bb, T, E]
    dec = dec_ref[...]                                   # [Bb, D]

    # Query projection: [Bb, A]  (weights already transposed -> no in-kernel .T)
    query = jnp.dot(dec, wqT_ref[...],
                    preferred_element_type=jnp.float32) + bq_ref[...]

    # ---- folded key projection ----
    # scores = (enc @ Wk^T + bk) @ q / sqrt(A)
    #        = (enc @ (Wk^T q) + bk.q) / sqrt(A)
    kq = jnp.dot(query, wk_ref[...],
                 preferred_element_type=jnp.float32)      # [Bb, E]
    bkq = jnp.sum(query * bk_ref[...], axis=-1,
                  keepdims=True)                          # [Bb, 1]

    # VPU multiply + lane reduce over E (no N=1 MXU matvec).
    scores = (jnp.sum(enc * kq[:, None, :], axis=-1) + bkq) * inv_scaling  # [Bb, T]

    # Length mask: t >= enc_len[b] -> large finite negative (no NaN for
    # fully-masked / padded rows).
    t_idx = jax.lax.broadcasted_iota(jnp.int32, (Bb, T), 1)
    scores = jnp.where(t_idx < lens_ref[...], scores, -1e30)

    # Softmax over T (lane axis) — reciprocal on the EUP.
    m = jnp.max(scores, axis=-1, keepdims=True)
    e = jnp.exp(scores - m)
    s = jnp.sum(e, axis=-1, keepdims=True)
    w = e * pl.reciprocal(s, approx=True)                 # [Bb, T]

    # ---- folded value projection ----
    # out = w @ (enc @ Wv^T + bv) = (w @ enc) @ Wv^T + bv   (sum_T w == 1)
    wenc = jnp.sum(enc * w[:, :, None], axis=1)           # [Bb, E]
    ctx = jnp.dot(wenc, wvT_ref[...],
                  preferred_element_type=jnp.float32) + bv_ref[...]  # [Bb, O]

    out_ref[...] = ctx.astype(out_ref.dtype)
    attw_ref[...] = w.astype(attw_ref.dtype)


def key_value_attention(enc_states, enc_len, dec_states, params, block_b=8):
    """Pallas KeyValueAttention forward.

    enc_states : [B, T, E] float32
    enc_len    : [B] int32 (valid lengths)
    dec_states : [B, D] float32
    params     : dict with wk [A,E], bk [A], wq [A,D], bq [A], wv [O,E], bv [O]
                 (PyTorch Linear layout: [out_features, in_features])
    returns (out [B, O], attn_w [B, 1, T])
    """
    B, T, E = enc_states.shape
    D = dec_states.shape[1]
    A = params["wk"].shape[0]
    O = params["wv"].shape[0]

    # Pre-transpose weights once in XLA (done outside the grid loop).
    wk = params["wk"]                       # [A, E]  (used natively for Wk^T q)
    wqT = params["wq"].T                    # [D, A]
    wvT = params["wv"].T                    # [E, O]
    bk = params["bk"].reshape(1, A)
    bq = params["bq"].reshape(1, A)
    bv = params["bv"].reshape(1, O)

    # Batch blocking (pad B to a multiple of the block so every block is full;
    # padded rows have enc_len == 0 and are sliced off afterwards).
    Bblk = B if B <= block_b else block_b
    n_blk = pl.cdiv(B, Bblk)
    Bpad = n_blk * Bblk

    lens = enc_len.astype(jnp.int32).reshape(B, 1)
    if Bpad != B:
        enc_states = jnp.pad(enc_states, ((0, Bpad - B), (0, 0), (0, 0)))
        dec_states = jnp.pad(dec_states, ((0, Bpad - B), (0, 0)))
        lens = jnp.pad(lens, ((0, Bpad - B), (0, 0)))

    grid_spec = pltpu.PrefetchScalarGridSpec(
        num_scalar_prefetch=0,
        grid=(n_blk,),
        in_specs=[
            pl.BlockSpec((Bblk, T, E), lambda i: (i, 0, 0)),   # enc_states
            pl.BlockSpec((Bblk, D), lambda i: (i, 0)),         # dec_states
            pl.BlockSpec((Bblk, 1), lambda i: (i, 0)),         # enc_len
            pl.BlockSpec((A, E), lambda i: (0, 0)),            # Wk  (native)
            pl.BlockSpec((1, A), lambda i: (0, 0)),            # bk
            pl.BlockSpec((D, A), lambda i: (0, 0)),            # Wq^T
            pl.BlockSpec((1, A), lambda i: (0, 0)),            # bq
            pl.BlockSpec((E, O), lambda i: (0, 0)),            # Wv^T
            pl.BlockSpec((1, O), lambda i: (0, 0)),            # bv
        ],
        out_specs=[
            pl.BlockSpec((Bblk, O), lambda i: (i, 0)),         # context out
            pl.BlockSpec((Bblk, T), lambda i: (i, 0)),         # attn weights slab
        ],
    )

    out, attw = pl.pallas_call(
        _kv_attention_kernel,
        grid_spec=grid_spec,
        out_shape=(
            jax.ShapeDtypeStruct((Bpad, O), jnp.float32),
            jax.ShapeDtypeStruct((Bpad, T), jnp.float32),
        ),
        compiler_params=pltpu.CompilerParams(
            dimension_semantics=("parallel",),       # batch blocks shard across TCs
            vmem_limit_bytes=32 * 1024 * 1024,       # explicit budget (v7x-safe)
        ),
    )(enc_states, dec_states, lens, wk, bk, wqT, bq, wvT, bv)

    out = out[:B]
    attw = attw[:B][:, None, :]                      # lane-dense slab -> [B, 1, T]
    return out, attw


def _reference(enc_states, enc_len, dec_states, params):
    """Pure-JAX reference matching the PyTorch forward."""
    A = params["wk"].shape[0]
    keys = enc_states @ params["wk"].T + params["bk"]          # [B,T,A]
    values = enc_states @ params["wv"].T + params["bv"]        # [B,T,O]
    query = dec_states @ params["wq"].T + params["bq"]         # [B,A]
    scores = jnp.einsum("bta,ba->bt", keys, query) / jnp.sqrt(jnp.float32(A))
    t_idx = jnp.arange(enc_states.shape[1])[None, :]
    mask = t_idx < enc_len[:, None]
    scores = jnp.where(mask, scores, -jnp.inf)
    w = jax.nn.softmax(scores, axis=1)                          # [B,T]
    out = jnp.einsum("bt,bto->bo", w, values)
    return out, w[:, None, :]


if __name__ == "__main__":
    # Small shapes consistent with the module's forward.
    B, T = 2, 8
    enc_dim, dec_dim, attn_dim, output_dim = 16, 32, 16, 8

    key = jax.random.PRNGKey(0)
    k = jax.random.split(key, 9)
    enc_states = jax.random.normal(k[0], (B, T, enc_dim), dtype=jnp.float32)
    dec_states = jax.random.normal(k[1], (B, dec_dim), dtype=jnp.float32)
    enc_len = jnp.array([T, T - 3], dtype=jnp.int32)

    # Deterministic parameter init (Linear: weight [out, in], bias [out]).
    def init_linear(kw, kb, fan_in, fan_out):
        bound = 1.0 / math.sqrt(fan_in)
        w = jax.random.uniform(kw, (fan_out, fan_in), jnp.float32, -bound, bound)
        b = jax.random.uniform(kb, (fan_out,), jnp.float32, -bound, bound)
        return w, b

    wk, bk = init_linear(k[2], k[3], enc_dim, attn_dim)
    wq, bq = init_linear(k[4], k[5], dec_dim, attn_dim)
    wv, bv = init_linear(k[6], k[7], enc_dim, output_dim)
    params = {"wk": wk, "bk": bk, "wq": wq, "bq": bq, "wv": wv, "bv": bv}

    out, attw = key_value_attention(enc_states, enc_len, dec_states, params)
    jax.block_until_ready((out, attw))

    ref_out, ref_attw = _reference(enc_states, enc_len, dec_states, params)
    assert out.shape == (B, output_dim)
    assert attw.shape == (B, 1, T)
    # Tolerance accounts for the approximate EUP reciprocal used in the softmax
    # normalization and the algebraically-folded (re-associated) projections.
    assert jnp.allclose(out, ref_out, atol=2e-3, rtol=2e-3)
    assert jnp.allclose(attw, ref_attw, atol=2e-3, rtol=2e-3)

    print("KERNEL_OK")
</pallas_src>

<mosaic_0001>
module attributes {stable_mosaic.version = 11 : i64} {
  func.func @_kv_attention_kernel(%arg0: i32, %arg1: memref<2x8x16xf32, #tpu.memory_space<vmem>>, %arg2: memref<2x32xf32, #tpu.memory_space<vmem>>, %arg3: memref<2x1xi32, #tpu.memory_space<vmem>>, %arg4: memref<16x16xf32, #tpu.memory_space<vmem>>, %arg5: memref<1x16xf32, #tpu.memory_space<vmem>>, %arg6: memref<32x16xf32, #tpu.memory_space<vmem>>, %arg7: memref<1x16xf32, #tpu.memory_space<vmem>>, %arg8: memref<16x8xf32, #tpu.memory_space<vmem>>, %arg9: memref<1x8xf32, #tpu.memory_space<vmem>>, %arg10: memref<2x8xf32, #tpu.memory_space<vmem>>, %arg11: memref<2x8xf32, #tpu.memory_space<vmem>>) attributes {dimension_semantics = [#tpu.dimension_semantics<parallel>], iteration_bounds = array<i64: 1>, scalar_prefetch = 0 : i64, scratch_operands = 0 : i64, tpu.core_type = #tpu.core_type<tc>, window_params = [{transform_indices = @transform_0, window_bounds = array<i64: 2, 8, 16>}, {transform_indices = @transform_1, window_bounds = array<i64: 2, 32>}, {transform_indices = @transform_2, window_bounds = array<i64: 2, 1>}, {pipeline_mode = #tpu.pipeline_mode<synchronous>, transform_indices = @transform_3, window_bounds = array<i64: 16, 16>}, {pipeline_mode = #tpu.pipeline_mode<synchronous>, transform_indices = @transform_4, window_bounds = array<i64: 1, 16>}, {pipeline_mode = #tpu.pipeline_mode<synchronous>, transform_indices = @transform_5, window_bounds = array<i64: 32, 16>}, {pipeline_mode = #tpu.pipeline_mode<synchronous>, transform_indices = @transform_6, window_bounds = array<i64: 1, 16>}, {pipeline_mode = #tpu.pipeline_mode<synchronous>, transform_indices = @transform_7, window_bounds = array<i64: 16, 8>}, {pipeline_mode = #tpu.pipeline_mode<synchronous>, transform_indices = @transform_8, window_bounds = array<i64: 1, 8>}, {transform_indices = @transform_9, window_bounds = array<i64: 2, 8>}, {transform_indices = @transform_10, window_bounds = array<i64: 2, 8>}]} {
    %c0 = arith.constant 0 : index
    %c0_0 = arith.constant 0 : index
    %c0_1 = arith.constant 0 : index
    %0 = vector.load %arg1[%c0, %c0_0, %c0_1] : memref<2x8x16xf32, #tpu.memory_space<vmem>>, vector<2x8x16xf32>
    %c0_2 = arith.constant 0 : index
    %c0_3 = arith.constant 0 : index
    %1 = vector.load %arg2[%c0_2, %c0_3] : memref<2x32xf32, #tpu.memory_space<vmem>>, vector<2x32xf32>
    %c0_4 = arith.constant 0 : index
    %c0_5 = arith.constant 0 : index
    %2 = vector.load %arg6[%c0_4, %c0_5] : memref<32x16xf32, #tpu.memory_space<vmem>>, vector<32x16xf32>
    %cst = arith.constant dense<0.000000e+00> : vector<2x16xf32>
    %3 = tpu.matmul %1, %2, %cst {dimension_numbers = #tpu.dot_dimension_numbers<[1], [0], [0], [1], [0, 0, 1, 1], [], []>} : vector<2x32xf32>, vector<32x16xf32>, vector<2x16xf32> -> vector<2x16xf32>
    %c0_6 = arith.constant 0 : index
    %c0_7 = arith.constant 0 : index
    %4 = vector.load %arg7[%c0_6, %c0_7] : memref<1x16xf32, #tpu.memory_space<vmem>>, vector<1x16xf32>
    %5 = vector.broadcast %4 : vector<1x16xf32> to vector<2x16xf32>
    %6 = arith.addf %3, %5 : vector<2x16xf32>
    %c0_8 = arith.constant 0 : index
    %c0_9 = arith.constant 0 : index
    %7 = vector.load %arg4[%c0_8, %c0_9] : memref<16x16xf32, #tpu.memory_space<vmem>>, vector<16x16xf32>
    %cst_10 = arith.constant dense<0.000000e+00> : vector<2x16xf32>
    %8 = tpu.matmul %6, %7, %cst_10 {dimension_numbers = #tpu.dot_dimension_numbers<[1], [0], [0], [1], [0, 0, 1, 1], [], []>} : vector<2x16xf32>, vector<16x16xf32>, vector<2x16xf32> -> vector<2x16xf32>
    %c0_11 = arith.constant 0 : index
    %c0_12 = arith.constant 0 : index
    %9 = vector.load %arg5[%c0_11, %c0_12] : memref<1x16xf32, #tpu.memory_space<vmem>>, vector<1x16xf32>
    %10 = vector.broadcast %9 : vector<1x16xf32> to vector<2x16xf32>
    %11 = arith.mulf %6, %10 : vector<2x16xf32>
    %cst_13 = arith.constant dense<0.000000e+00> : vector<2xf32>
    %12 = vector.multi_reduction <add>, %11, %cst_13 [1] : vector<2x16xf32> to vector<2xf32>
    %13 = vector.shape_cast %12 : vector<2xf32> to vector<2x1xf32>
    %14 = vector.shape_cast %8 : vector<2x16xf32> to vector<2x1x16xf32>
    %15 = vector.broadcast %14 : vector<2x1x16xf32> to vector<2x8x16xf32>
    %16 = arith.mulf %0, %15 : vector<2x8x16xf32>
    %cst_14 = arith.constant dense<0.000000e+00> : vector<2x8xf32>
    %17 = vector.multi_reduction <add>, %16, %cst_14 [2] : vector<2x8x16xf32> to vector<2x8xf32>
    %18 = vector.broadcast %13 : vector<2x1xf32> to vector<2x8xf32>
    %19 = arith.addf %17, %18 : vector<2x8xf32>
    %cst_15 = arith.constant 2.500000e-01 : f32
    %20 = vector.broadcast %cst_15 : f32 to vector<2x8xf32>
    %21 = arith.mulf %19, %20 : vector<2x8xf32>
    %22 = tpu.iota {dimensions = array<i32: 1>} : vector<2x8xi32>
    %c0_16 = arith.constant 0 : index
    %c0_17 = arith.constant 0 : index
    %23 = vector.load %arg3[%c0_16, %c0_17] : memref<2x1xi32, #tpu.memory_space<vmem>>, vector<2x1xi32>
    %24 = vector.broadcast %23 : vector<2x1xi32> to vector<2x8xi32>
    %25 = arith.cmpi slt, %22, %24 : vector<2x8xi32>
    %cst_18 = arith.constant -1.000000e+30 : f32
    %26 = vector.broadcast %cst_18 : f32 to vector<2x8xf32>
    %27 = arith.select %25, %21, %26 : vector<2x8xi1>, vector<2x8xf32>
    %cst_19 = arith.constant dense<0xFF800000> : vector<2xf32>
    %28 = vector.multi_reduction <maximumf>, %27, %cst_19 [1] : vector<2x8xf32> to vector<2xf32>
    %29 = vector.shape_cast %28 : vector<2xf32> to vector<2x1xf32>
    %30 = vector.broadcast %29 : vector<2x1xf32> to vector<2x8xf32>
    %31 = arith.subf %27, %30 : vector<2x8xf32>
    %32 = math.exp %31 : vector<2x8xf32>
    %cst_20 = arith.constant dense<0.000000e+00> : vector<2xf32>
    %33 = vector.multi_reduction <add>, %32, %cst_20 [1] : vector<2x8xf32> to vector<2xf32>
    %34 = vector.shape_cast %33 : vector<2xf32> to vector<2x1xf32>
    %35 = tpu.reciprocal %34 {approx = true} : vector<2x1xf32> -> vector<2x1xf32>
    %36 = vector.broadcast %35 : vector<2x1xf32> to vector<2x8xf32>
    %37 = arith.mulf %32, %36 : vector<2x8xf32>
    %38 = vector.shape_cast %37 : vector<2x8xf32> to vector<2x8x1xf32>
    %39 = vector.broadcast %38 : vector<2x8x1xf32> to vector<2x8x16xf32>
    %40 = arith.mulf %0, %39 : vector<2x8x16xf32>
    %cst_21 = arith.constant dense<0.000000e+00> : vector<2x16xf32>
    %41 = vector.multi_reduction <add>, %40, %cst_21 [1] : vector<2x8x16xf32> to vector<2x16xf32>
    %c0_22 = arith.constant 0 : index
    %c0_23 = arith.constant 0 : index
    %42 = vector.load %arg8[%c0_22, %c0_23] : memref<16x8xf32, #tpu.memory_space<vmem>>, vector<16x8xf32>
    %cst_24 = arith.constant dense<0.000000e+00> : vector<2x8xf32>
    %43 = tpu.matmul %41, %42, %cst_24 {dimension_numbers = #tpu.dot_dimension_numbers<[1], [0], [0], [1], [0, 0, 1, 1], [], []>} : vector<2x16xf32>, vector<16x8xf32>, vector<2x8xf32> -> vector<2x8xf32>
    %c0_25 = arith.constant 0 : index
    %c0_26 = arith.constant 0 : index
    %44 = vector.load %arg9[%c0_25, %c0_26] : memref<1x8xf32, #tpu.memory_space<vmem>>, vector<1x8xf32>
    %45 = vector.broadcast %44 : vector<1x8xf32> to vector<2x8xf32>
    %46 = arith.addf %43, %45 : vector<2x8xf32>
    %c0_27 = arith.constant 0 : index
    %c0_28 = arith.constant 0 : index
    %47 = vector.load %arg10[%c0_27, %c0_28] : memref<2x8xf32, #tpu.memory_space<vmem>>, vector<2x8xf32>
    tpu.vector_store %arg10[%c0_27, %c0_28], %46 {strides = array<i32>} : memref<2x8xf32, #tpu.memory_space<vmem>>, vector<2x8xf32>,
    %c0_29 = arith.constant 0 : index
    %c0_30 = arith.constant 0 : index
    %48 = vector.load %arg11[%c0_29, %c0_30] : memref<2x8xf32, #tpu.memory_space<vmem>>, vector<2x8xf32>
    tpu.vector_store %arg11[%c0_29, %c0_30], %37 {strides = array<i32>} : memref<2x8xf32, #tpu.memory_space<vmem>>, vector<2x8xf32>,
    return
  }
  func.func @transform_0(%arg0: i32) -> (i32, i32, i32) {
    %c0_i32 = arith.constant 0 : i32
    %c0_i32_0 = arith.constant 0 : i32
    %c0_i32_1 = arith.constant 0 : i32
    return %arg0, %c0_i32, %c0_i32_0 : i32, i32, i32
  }
  func.func @transform_1(%arg0: i32) -> (i32, i32) {
    %c0_i32 = arith.constant 0 : i32
    %c0_i32_0 = arith.constant 0 : i32
    return %arg0, %c0_i32 : i32, i32
  }
  func.func @transform_2(%arg0: i32) -> (i32, i32) {
    %c0_i32 = arith.constant 0 : i32
    %c0_i32_0 = arith.constant 0 : i32
    return %arg0, %c0_i32 : i32, i32
  }
  func.func @transform_3(%arg0: i32) -> (i32, i32) {
    %c0_i32 = arith.constant 0 : i32
    %c0_i32_0 = arith.constant 0 : i32
    %c0_i32_1 = arith.constant 0 : i32
    return %c0_i32, %c0_i32_0 : i32, i32
  }
  func.func @transform_4(%arg0: i32) -> (i32, i32) {
    %c0_i32 = arith.constant 0 : i32
    %c0_i32_0 = arith.constant 0 : i32
    %c0_i32_1 = arith.constant 0 : i32
    return %c0_i32, %c0_i32_0 : i32, i32
  }
  func.func @transform_5(%arg0: i32) -> (i32, i32) {
    %c0_i32 = arith.constant 0 : i32
    %c0_i32_0 = arith.constant 0 : i32
    %c0_i32_1 = arith.constant 0 : i32
    return %c0_i32, %c0_i32_0 : i32, i32
  }
  func.func @transform_6(%arg0: i32) -> (i32, i32) {
    %c0_i32 = arith.constant 0 : i32
    %c0_i32_0 = arith.constant 0 : i32
    %c0_i32_1 = arith.constant 0 : i32
    return %c0_i32, %c0_i32_0 : i32, i32
  }
  func.func @transform_7(%arg0: i32) -> (i32, i32) {
    %c0_i32 = arith.constant 0 : i32
    %c0_i32_0 = arith.constant 0 : i32
    %c0_i32_1 = arith.constant 0 : i32
    return %c0_i32, %c0_i32_0 : i32, i32
  }
  func.func @transform_8(%arg0: i32) -> (i32, i32) {
    %c0_i32 = arith.constant 0 : i32
    %c0_i32_0 = arith.constant 0 : i32
    %c0_i32_1 = arith.constant 0 : i32
    return %c0_i32, %c0_i32_0 : i32, i32
  }
  func.func @transform_9(%arg0: i32) -> (i32, i32) {
    %c0_i32 = arith.constant 0 : i32
    %c0_i32_0 = arith.constant 0 : i32
    return %arg0, %c0_i32 : i32, i32
  }
  func.func @transform_10(%arg0: i32) -> (i32, i32) {
    %c0_i32 = arith.constant 0 : i32
    %c0_i32_0 = arith.constant 0 : i32
    return %arg0, %c0_i32 : i32, i32
  }
}

</mosaic_0001>

<bundles_post_ra>
// kernel: tpu_custom_call.1
= control target key start
LH: loop header
LB: loop body
LE: loop exit
PB: predicated region body
PF: predicated region fallthrough
CT: control target
= control target key end

     0   :  { %16 = vsyncpa [#allocation3], 0  ;;  %v566_v3 = vmov 0.0|0.0   ;;  %vm567_vm0 = vmmov 0   ;;  %v568_v6 = vmov 0.0   ;;  %s726_s0 = inlined_call_operand.vmem [shape: f32[2,8,16], index: 0, kind: input, shape index: {}]   ;;  %s727_s1 = inlined_call_operand.vmem [shape: f32[2,32], index: 1, kind: input, shape index: {}]   ;;  %s728_s2 = inlined_call_operand.vmem [shape: s32[2,1], index: 2, kind: input, shape index: {}]   ;;  %s729_s3 = inlined_call_operand.vmem [shape: f32[16,16], index: 3, kind: input, shape index: {}]   ;;  %s730_s4 = inlined_call_operand.vmem [shape: f32[1,16], index: 4, kind: input, shape index: {}]   ;;  %s731_s5 = inlined_call_operand.vmem [shape: f32[32,16], index: 5, kind: input, shape index: {}]   ;;  %s732_s6 = inlined_call_operand.vmem [shape: f32[1,16], index: 6, kind: input, shape index: {}]   ;;  %s733_s7 = inlined_call_operand.vmem [shape: f32[16,8], index: 7, kind: input, shape index: {}]   ;;  %s734_s8 = inlined_call_operand.vmem [shape: f32[1,8], index: 8, kind: input, shape index: {}]   ;;  %s735_s9 = inlined_call_operand.hbm [shape: f32[2,8], index: 9, kind: output, shape index: {0}]   ;;  %s736_s10 = inlined_call_operand.hbm [shape: f32[2,8], index: 10, kind: output, shape index: {1}]  }
   0x1   :  { %v39_v0 = vld [vmem:[%s731_s5] sm:$0xff]  ;;  %v40_v1 = vld [vmem:[%s731_s5 + $0x8] sm:$0xff]  ;;  %v41_v2 = vld [vmem:[%s731_s5 + $0x10] sm:$0xff]  ;;  %493 = vmatprep.subr.bf16.mxu0 %v566_v3  ;;  %476 = vmatprep.mubr.msk.f32.mxu0 %vm567_vm0, %v568_v6 }
   0x2   :  { %v494_v4 = vpack.c.bf16 %v40_v1, %v39_v0  ;;  %v42_v5 = vld [vmem:[%s731_s5 + $0x18] sm:$0xff]  ;;  %499 = vmatprep.subr.bf16.mxu1 %v566_v3  ;;  %483 = vmatprep.mubr.msk.f32.mxu1 %vm567_vm0, %v568_v6 }
   0x3   :  { %17 = vsyncpa [#allocation5], 0  ;;  %v497_v7 = vpack.c.bf16 %v42_v5, %v41_v2  ;;  %v38_v8 = vld [vmem:[%s727_s1] sm:$0x3]  ;;  %vm50_vm1 = vcmask 261120   ;;  %v125_v10 = vld [vmem:[%s729_s3 + $0x8] sm:$0xff]  ;;  %v216_v21 = vlaneseq }
   0x4   :  { %495 = vmatpush3.bf16.msra.mxu0 %v494_v4  ;;  %v124_v9 = vld [vmem:[%s729_s3] sm:$0xff]  ;;  %vm126_vm2 = vcmask 130048   ;;  %vm208_vm3 = vcmask 123904   ;;  %v569_v19 = vmov 1966171168   ;;  %v671_v34 = vld [vmem:[%s726_s0 + $0x8] sm:$0xff] }
   0x5   :  { %496 = vmatprep.subr.bf16.mxu0 %v566_v3  ;;  %v500_v11 = vpack.c.bf16 %v125_v10, %v124_v9  ;;  %v451_v12 = vld [vmem:[%s732_s6] ss:$0 sm:$0xff]  ;;  %v214_v20 = vunpack.c.l.s4 %v569_v19  ;;  %v659_v23 = vshrl.u32 %v216_v21, 7  ;;  %v570_v40 = vmov 0  }
   0x6   :  { %v454_v14 = vld [vmem:[%s730_s4] ss:$0 sm:$0xff]  ;;  %512 = vset.pattern.permute.xlu1 %v570_v40  ;;  %513 = vset.pattern.permute.xlu0 %v570_v40  ;;  %v269_v52 = vand.u32 127, %v216_v21  ;;  %vm291_vm4 = vcmask 1041409   ;;  %vm295_vm5 = vcmask 58368  }
   0x7   :  { %501 = vmatpush3.bf16.msra.mxu1 %v500_v11  ;;  %v215_v22 = vunpack.c.0.s8 %v214_v20  ;;  %v237_v28 = vsub.s32 0, %v659_v23  ;;  %v666_v31 = vld [vmem:[%s726_s0] sm:$0xff]  ;;  %v260_v42 = vsub.s32 1, %v659_v23 }
   0x8   :  { %498 = vmatpush3.bf16.msra.mxu0 %v497_v7  ;;  %502 = vmatprep.subr.bf16.mxu1 %v566_v3  ;;  %v270_v51 = vld [vmem:[%s728_s2] sm:$0x3]  ;;  %v285_v53 = vsub.s32 %v269_v52, %v659_v23 }
   0x9   :  { %v218_v24 = vsub.s32 %v215_v22, %v659_v23  ;;  %v337_v7 = vld [vmem:[%s733_s7] sm:$0xff] }
   0xb   :  { %477 = vmatmul.mubr.msk.f32.vlgmr.msra.gmra.mrb[0].mxu0 %vm50_vm1, %v38_v8  ;;  %v338_v8 = vld [vmem:[%s733_s7 + $0x8] sm:$0xff]  ;;  %s571_s7 = smov [#allocation4]  }
   0xc   :  { %v503_v10 = vpack.c.bf16 %v338_v8, %v337_v7  ;;  %s439_s14 = sshll.u32 %s571_s7, 4  ;;  %s440_s14 = int_to_ptr.vmem [resolvable:$true] %s439_s14 }
   0xd   :  { %s518_s15 = scalar_lea.vmem %s440_s14, 32  ;;  %p523_p1 = scmp.lt.s32.totalorder %s440_s14, %s440_s14 }
   0xe   :  { %p519_p0 = scmp.ne.s32.totalorder %s440_s14, %s518_s15  ;;  %p524_p2 = scmp.lt.s32.totalorder %s518_s15, %s518_s15 }
  0x10   :  { %p525_p3 = por %p524_p2, %p523_p1 }
  0x12   :  { %p526_p4 = pnand %p525_p3, %p519_p0 }
  0xde   :  { %v120_v13 = vpop.f32.mrb[0].mxu0 }
  0xdf   :  { %v121_v15 = vadd.f32 %v451_v12, %v120_v13  ;;  %v478_v16 = vpop.f32.mrb[1].mxu0 }
  0xe1   :  { %484 = vmatmul.mubr.msk.f32.vlgmr.msra.gmra.mrb[0].mxu1 %vm126_vm2, %v121_v15  ;;  %v207_v17 = vmul.f32 %v454_v14, %v121_v15 }
  0xe2   :  { %490 = vmatprep.mubr.msk.f32.mxu1 %vm567_vm0, %v568_v6  ;;  %504 = vmatpush3.bf16.msra.mxu1 %v503_v10 }
  0xe3   :  { %v209_v18 = vsel %vm208_vm3, %v207_v17, 0.0 }
  0xe4   :  { %210 = vadd.xlane.f32.xlu0 %v209_v18 }
 0x171   :  { %v211_v41 = vpop.xlane.xlu0 %210 }
 0x172   :  { %v257_v43 = vrot.slane %v211_v41, %v237_v28  ;;  %v261_v45 = vrot.slane %v211_v41, %v260_v42 }
 0x1b4   :  { %v196_v25 = vpop.f32.mrb[0].mxu1 }
 0x1b5   :  { %v219_v26 = vrot.slane %v196_v25, %v218_v24  ;;  %v485_v27 = vpop.f32.mrb[1].mxu1 }
 0x1b7   :  { %v220_v29 = vcombine.high %v219_v26, %v219_v26  ;;  %v227_v30 = vrot.slane %v219_v26, %v218_v24 }
 0x1b9   :  { %v234_v32 = vrot.slane %v220_v29, %v218_v24  ;;  %v238_v33 = vrot.slane %v227_v30, %v237_v28 }
 0x1bb   :  { %v245_v35 = vmul.f32 %v238_v33, %v666_v31  ;;  %v242_v36 = vrot.slane %v234_v32, %v237_v28 }
 0x1bd   :  { %v247_v37 = vsel %vm126_vm2, %v245_v35, 0.0  ;;  %v246_v38 = vmul.f32 %v242_v36, %v671_v34 }
 0x1be   :  { %248 = vadd.xlane.f32.xlu0 %v247_v37 }
 0x1bf   :  { %v250_v39 = vsel %vm126_vm2, %v246_v38, 0.0 }
 0x1c0   :  { %251 = vadd.xlane.f32.xlu1 %v250_v39 }
 0x24b   :  { %v249_v44 = vpop.xlane.xlu0 %248 }
 0x24c   :  { %v264_v46 = vadd.f32 %v257_v43, %v249_v44 }
 0x24d   :  { %v252_v47 = vpop.xlane.xlu1 %251 }
 0x24e   :  { %v266_v48 = vmul.f32 0.25, %v264_v46  ;;  %v265_v49 = vadd.f32 %v261_v45, %v252_v47 }
 0x250   :  { %v267_v50 = vmul.f32 0.25, %v265_v49  ;;  %278 = vperm.xlu1 %512, %v266_v48  }
 0x252   :  { %281 = vperm.xlu0 %513, %v267_v50  }
 0x254   :  { %272 = vperm.xlu1 %512, %v270_v51  }
 0x2cf   :  { %v279_v54 = vpop.permute.xlu1 %278 }
 0x2d0   :  { %v286_v56 = vrot.slane %v279_v54, %v285_v53 }
 0x2d1   :  { %v282_v55 = vpop.permute.xlu0 %281 }
 0x2d2   :  { %v290_v57 = vrot.slane %v282_v55, %v285_v53 }
 0x2d3   :  { %v273_v58 = vpop.permute.xlu1 %272 }
 0x2d4   :  { %vm274_vm6 = vcmp.lt.s32.totalorder %v269_v52, %v273_v58  ;;  %v292_v59 = vsel %vm291_vm4, %v290_v57, %v286_v56 }
 0x2d5   :  { %v294_v60 = vsel %vm274_vm6, %v292_v59, -1e+30 }
 0x2d6   :  { %v296_v61 = vsel %vm295_vm5, %v294_v60, -inf }
 0x2d7   :  { %297 = vmax.xlane.f32.xlu1 %v296_v61 }
 0x364   :  { %v298_v62 = vpop.xlane.xlu1 %297 }
 0x365   :  { %v299_v63 = vsub.f32 %v294_v60, %v298_v62 }
 0x367   :  { %v300_v0 = vmul.f32 1.442695, %v299_v63 }
 0x369   :  { %514 = vpow2.f32 %v300_v0 }
 0x373   :  { %v515_v1 = vpop.eup %514 }
 0x374   :  { %v302_v2 = vsel %vm295_vm5, %v515_v1, 0.0 }
 0x375   :  { %303 = vadd.xlane.f32.xlu0 %v302_v2 }
 0x402   :  { %v304_v3 = vpop.xlane.xlu0 %303 }
 0x403   :  { %516 = vrcp.f32 %v304_v3 }
 0x40d   :  { %v517_v4 = vpop.eup %516 }
 0x40e   :  { %v306_v5 = vmul.f32 %v517_v4, %v515_v1 }
 0x410   :  { %v310_v6 = vrot.slane %v306_v5, %v237_v28  ;;  %422 = vst.msk [vmem:[#allocation4] sm:$0x3] %vm295_vm5, %v306_v5  ;;  %v317_v9 = vrot.slane %v306_v5, %v260_v42 }
 0x412   :  { %312 = vbcast.lane.b32.xlu1 %v310_v6, 256 }
 0x416   :  { %319 = vbcast.lane.b32.xlu1 %v317_v9, 256 }
 0x484   :  { %v313_v11 = vpop.permute.xlu1 %312 }
 0x485   :  { %v321_v12 = vmul.f32 %v313_v11, %v666_v31 }
 0x487   :  { %v323_v13 = vsel %vm126_vm2, %v321_v12, 0.0 }
 0x488   :  { %v324_v14 = vrot.slane %v323_v13, 4  ;;  %v320_v15 = vpop.permute.xlu1 %319 }
 0x489   :  { %v322_v16 = vmul.f32 %v320_v15, %v671_v34 }
 0x48a   :  { %v325_v17 = vadd.f32 %v324_v14, %v323_v13 }
 0x48b   :  { %v330_v18 = vsel %vm126_vm2, %v322_v16, 0.0 }
 0x48c   :  { %v326_v19 = vrot.slane %v325_v17, 2  ;;  %v331_v20 = vrot.slane %v330_v18, 4 }
 0x48e   :  { %v327_v21 = vadd.f32 %v326_v19, %v325_v17  ;;  %v332_v22 = vadd.f32 %v331_v20, %v330_v18 }
 0x490   :  { %v333_v23 = vrot.slane %v332_v22, 2  ;;  %v328_v24 = vrot.slane %v327_v21, 1 }
 0x492   :  { %v334_v25 = vadd.f32 %v333_v23, %v332_v22  ;;  %v329_v27 = vadd.f32 %v328_v24, %v327_v21 }
 0x494   :  { %v335_v26 = vrot.slane %v334_v25, 1 }
 0x496   :  { %v336_v28 = vadd.f32 %v335_v26, %v334_v25 }
 0x498   :  { %v348_v29 = vsel %vm291_vm4, %v336_v28, %v329_v27 }
 0x499   :  { %491 = vmatmul.mubr.msk.f32.vlgmr.msra.gmra.mrb[2].mxu1 %vm126_vm2, %v348_v29 }
 0x49a   :  { %529 = shalt.err (!%p526_p4)
}
 0x49b   :  { %s530_s18 = scalar_lea.hbm %s736_s10, 32 }
 0x49c   :  { %p531_p5 = scmp.ne.s32.totalorder %s736_s10, %s530_s18  ;;  %p534_p6 = scmp.lt.u32.totalorder %s530_s18, %s736_s10 }
 0x49e   :  { %p536_p7 = pnand %p534_p6, %p531_p5 }
 0x4a0   :  { %539 = shalt.err (!%p536_p7)
}
 0x4a1   :  { %442 = dma.vmem_to_hbm [thread:$0]  %s440_s14, 32, %s736_s10, [#allocation5]   ;;  %v455_v30 = vld [vmem:[%s734_s8] ss:$0 sm:$0xff] }
 0x4a2   :  { %s572_s26 = smov [#allocation2]  }
 0x4a3   :  { %s429_s27 = sshll.u32 %s572_s26, 4  ;;  %s430_s27 = int_to_ptr.vmem [resolvable:$true] %s429_s27 }
 0x4a4   :  { %s540_s1 = scalar_lea.vmem %s430_s27, 32  ;;  %p545_p9 = scmp.lt.s32.totalorder %s430_s27, %s430_s27 }
 0x4a5   :  { %p541_p8 = scmp.ne.s32.totalorder %s430_s27, %s540_s1  ;;  %p546_p10 = scmp.lt.s32.totalorder %s540_s1, %s540_s1 }
 0x4a7   :  { %p547_p11 = por %p546_p10, %p545_p9 }
 0x4a9   :  { %p548_p12 = pnand %p547_p11, %p541_p8 }
 0x56c   :  { %v417_v31 = vpop.f32.mrb[2].mxu1 }
 0x56d   :  { %v418_v32 = vadd.f32 %v455_v30, %v417_v31  ;;  %v492_v33 = vpop.f32.mrb[3].mxu1 }
 0x56f   :  { %421 = vst.msk [vmem:[#allocation2] sm:$0x3] %vm295_vm5, %v418_v32 }
 0x570   :  { %551 = shalt.err (!%p548_p12)
}
 0x571   :  { %s552_s3 = scalar_lea.hbm %s735_s9, 32 }
 0x572   :  { %p553_p13 = scmp.ne.s32.totalorder %s735_s9, %s552_s3  ;;  %p556_p0 = scmp.lt.u32.totalorder %s552_s3, %s735_s9 }
 0x574   :  { %p558_p1 = pnand %p556_p0, %p553_p13 }
 0x576   :  { %561 = shalt.err (!%p558_p1)
}
 0x577   :  { %432 = dma.vmem_to_hbm [thread:$0]  %s430_s27, 32, %s735_s9, [#allocation3]  }
 0x578   :  { %562 = dma.done.wait [#allocation3], 32  }
 0x579   :  { %563 = vsyncadd [#allocation3], 4294967264 }
 0x57a   :  { %564 = dma.done.wait [#allocation5], 32  }
 0x57b   :  { %565 = vsyncadd [#allocation5], 4294967264 }
 0x57c   :  { %449 = vsyncpa [#allocation3], 1 }
 0x57d   :  { %450 = vsyncpa [#allocation5], 1 }

</bundles_post_ra>
